<compile_context>
chip_gen: v6e
topology: v6e:2x2x1
jax: 0.10.0
libtpu: 0.0.40
codegen_flags: <defaults>
</compile_context>

<pallas_src>
import functools
import math

import jax
import jax.numpy as jnp
from jax.experimental import pallas as pl
from jax.experimental.pallas import tpu as pltpu


def _pick_block(dim, target):
    """Largest clean tile: `target` if it divides `dim`, else the full dim."""
    return target if dim % target == 0 else dim


# ---------------------------------------------------------------------------
# Gridded linear kernel:  y[M, N] = x[M, K] @ W[N, K]^T + b[N]   (nn.Linear)
# ---------------------------------------------------------------------------
def _linear_kernel(x_ref, w_ref, b_ref, o_ref, acc_ref):
    k = pl.program_id(2)

    @pl.when(k == 0)
    def _():
        acc_ref[...] = jnp.zeros_like(acc_ref)

    # Contract x[:, K] with w[:, K]: PyTorch weight layout consumed natively,
    # no in-kernel transpose (MXU-friendly).
    acc_ref[...] += jax.lax.dot_general(
        x_ref[...], w_ref[...],
        dimension_numbers=(((1,), (1,)), ((), ())),
        preferred_element_type=jnp.float32,
    )

    @pl.when(k == pl.num_programs(2) - 1)
    def _():
        o_ref[...] = (acc_ref[...] + b_ref[...]).astype(o_ref.dtype)


def pallas_linear(x2d, w, b, *, bm=256, bn=256, bk=512):
    m, kdim = x2d.shape
    n = w.shape[0]
    bm = _pick_block(m, bm)
    bn = _pick_block(n, bn)
    bk = _pick_block(kdim, bk)
    grid = (m // bm, n // bn, kdim // bk)
    return pl.pallas_call(
        _linear_kernel,
        out_shape=jax.ShapeDtypeStruct((m, n), jnp.float32),
        grid=grid,
        in_specs=[
            pl.BlockSpec((bm, bk), lambda i, j, k: (i, k)),
            pl.BlockSpec((bn, bk), lambda i, j, k: (j, k)),
            pl.BlockSpec((1, bn), lambda i, j, k: (0, j)),
        ],
        out_specs=pl.BlockSpec((bm, bn), lambda i, j, k: (i, j)),
        scratch_shapes=[pltpu.VMEM((bm, bn), jnp.float32)],
        compiler_params=pltpu.CompilerParams(
            dimension_semantics=("parallel", "parallel", "arbitrary")
        ),
        cost_estimate=pl.CostEstimate(
            flops=2 * m * n * kdim,
            transcendentals=0,
            bytes_accessed=4 * (m * kdim + n * kdim + m * n + n),
        ),
    )(x2d, w, b.reshape(1, n))


# ---------------------------------------------------------------------------
# Fused residual-add + LayerNorm kernel (row-parallel)
# ---------------------------------------------------------------------------
def _add_layernorm_kernel(x_ref, y_ref, g_ref, b_ref, o_ref, *, eps):
    s = x_ref[...] + y_ref[...]
    mean = jnp.mean(s, axis=-1, keepdims=True)
    var = jnp.mean(jnp.square(s - mean), axis=-1, keepdims=True)
    o_ref[...] = g_ref[...] * ((s - mean) * jax.lax.rsqrt(var + eps)) + b_ref[...]


def pallas_add_layernorm(x2d, y2d, gamma, beta, *, eps=1e-12, bm=256):
    m, d = x2d.shape
    bm = _pick_block(m, bm)
    return pl.pallas_call(
        functools.partial(_add_layernorm_kernel, eps=eps),
        out_shape=jax.ShapeDtypeStruct((m, d), jnp.float32),
        grid=(m // bm,),
        in_specs=[
            pl.BlockSpec((bm, d), lambda i: (i, 0)),
            pl.BlockSpec((bm, d), lambda i: (i, 0)),
            pl.BlockSpec((1, d), lambda i: (0, 0)),
            pl.BlockSpec((1, d), lambda i: (0, 0)),
        ],
        out_specs=pl.BlockSpec((bm, d), lambda i: (i, 0)),
        compiler_params=pltpu.CompilerParams(dimension_semantics=("parallel",)),
    )(x2d, y2d, gamma.reshape(1, d), beta.reshape(1, d))


# ---------------------------------------------------------------------------
# GRU (1 layer, batch_first, h0 = 0) — PyTorch gate order (r, z, n)
# ---------------------------------------------------------------------------
def _gru_recurrence_kernel(gx_ref, whh_ref, bhh_ref, o_ref, h_ref, *, hidden):
    """Sequential GRU over time. gx_ref: [L, B, 3H] = x @ W_ih^T + b_ih."""
    seq_len = gx_ref.shape[0]
    h_ref[...] = jnp.zeros_like(h_ref)
    whh = whh_ref[...]          # [3H, H] — PyTorch layout, no transpose needed
    bhh = bhh_ref[...]          # [1, 3H]

    def step(t, carry):
        gx = gx_ref[t]          # [B, 3H]
        h = h_ref[...]          # [B, H]
        gh = jax.lax.dot_general(
            h, whh, dimension_numbers=(((1,), (1,)), ((), ())),
            preferred_element_type=jnp.float32) + bhh
        r = jax.nn.sigmoid(gx[:, :hidden] + gh[:, :hidden])
        z = jax.nn.sigmoid(gx[:, hidden:2 * hidden] + gh[:, hidden:2 * hidden])
        n = jnp.tanh(gx[:, 2 * hidden:] + r * gh[:, 2 * hidden:])
        h_new = (1.0 - z) * n + z * h
        h_ref[...] = h_new
        o_ref[t] = h_new
        return carry

    jax.lax.fori_loop(0, seq_len, step, 0)


def pallas_gru(x, w_ih, w_hh, b_ih, b_hh):
    B, L, H = x.shape
    # Heavy, parallel part: input projection for all timesteps at once.
    gx = pallas_linear(jnp.swapaxes(x, 0, 1).reshape(L * B, H), w_ih, b_ih)
    gx = gx.reshape(L, B, 3 * H)                 # time-major for the recurrence
    out = pl.pallas_call(
        functools.partial(_gru_recurrence_kernel, hidden=H),
        out_shape=jax.ShapeDtypeStruct((L, B, H), jnp.float32),
        grid=(1,),
        in_specs=[
            pl.BlockSpec((L, B, 3 * H), lambda i: (0, 0, 0)),
            pl.BlockSpec((3 * H, H), lambda i: (0, 0)),
            pl.BlockSpec((1, 3 * H), lambda i: (0, 0)),
        ],
        out_specs=pl.BlockSpec((L, B, H), lambda i: (0, 0, 0)),
        scratch_shapes=[pltpu.VMEM((B, H), jnp.float32)],
        compiler_params=pltpu.CompilerParams(dimension_semantics=("arbitrary",)),
    )(gx, w_hh, b_hh.reshape(1, 3 * H))
    return jnp.swapaxes(out, 0, 1)               # [B, L, H]


# ---------------------------------------------------------------------------
# Multi-head attention core: one grid step per batch, heads batched per step
# ---------------------------------------------------------------------------
def _attention_kernel(qkv_ref, o_ref, *, n_head, hidden):
    d_head = hidden // n_head
    qkv = qkv_ref[0]                                   # [L, 3H]
    q = qkv[:, :hidden] * (d_head ** -0.5)             # fold 1/sqrt(d) into q
    k = qkv[:, hidden:2 * hidden]
    v = qkv[:, 2 * hidden:]

    # Head split via static column slices (no wrapper-side HBM transposes).
    qh = jnp.stack([q[:, h * d_head:(h + 1) * d_head] for h in range(n_head)])
    kh = jnp.stack([k[:, h * d_head:(h + 1) * d_head] for h in range(n_head)])
    vh = jnp.stack([v[:, h * d_head:(h + 1) * d_head] for h in range(n_head)])
    # -> [n_head, L, d_head]

    logits = jnp.einsum("hqd,hkd->hqk", qh, kh,
                        preferred_element_type=jnp.float32)
    logits = logits - jnp.max(logits, axis=-1, keepdims=True)
    p = jnp.exp(logits)
    p = p * pl.reciprocal(jnp.sum(p, axis=-1, keepdims=True), approx=True)
    ctx = jnp.einsum("hqk,hkd->hqd", p, vh,
                     preferred_element_type=jnp.float32)  # [n_head, L, d_head]

    # Combine heads -> lane-dense [L, hidden] output slab.
    o_ref[0] = jnp.concatenate([ctx[h] for h in range(n_head)], axis=-1)


def pallas_attention(qkv, *, n_head, hidden):
    B, L, _ = qkv.shape
    d_head = hidden // n_head
    return pl.pallas_call(
        functools.partial(_attention_kernel, n_head=n_head, hidden=hidden),
        out_shape=jax.ShapeDtypeStruct((B, L, hidden), jnp.float32),
        grid=(B,),
        in_specs=[pl.BlockSpec((1, L, 3 * hidden), lambda b: (b, 0, 0))],
        out_specs=pl.BlockSpec((1, L, hidden), lambda b: (b, 0, 0)),
        compiler_params=pltpu.CompilerParams(dimension_semantics=("parallel",)),
        cost_estimate=pl.CostEstimate(
            flops=4 * B * n_head * L * L * d_head,
            transcendentals=B * n_head * L * L,
            bytes_accessed=4 * (B * L * 3 * hidden + B * L * hidden),
        ),
    )(qkv)


# ---------------------------------------------------------------------------
# GRUAttentionLayer forward (Pallas-backed, inference semantics)
# ---------------------------------------------------------------------------
def gru_attention_layer(params, x, *, n_head=8):
    B, L, H = x.shape

    # GRU
    gru_out = pallas_gru(x, params["gru_w_ih"], params["gru_w_hh"],
                         params["gru_b_ih"], params["gru_b_hh"])

    # dropout(p=0.2) -> identity (eval); residual + LayerNorm1 (fused)
    y1 = pallas_add_layernorm(
        x.reshape(B * L, H), gru_out.reshape(B * L, H),
        params["ln1_gamma"], params["ln1_beta"]).reshape(B, L, H)

    # attention: fused QKV projection -> per-batch attention -> output proj
    qkv = pallas_linear(y1.reshape(B * L, H),
                        params["attn_w_qkv"], params["attn_b_qkv"])
    ctx = pallas_attention(qkv.reshape(B, L, 3 * H), n_head=n_head, hidden=H)
    y2 = pallas_linear(ctx.reshape(B * L, H),
                       params["attn_w_o"], params["attn_b_o"]).reshape(B, L, H)

    # dropout -> identity (eval); residual + LayerNorm2 (fused)
    out = pallas_add_layernorm(
        y1.reshape(B * L, H), y2.reshape(B * L, H),
        params["ln2_gamma"], params["ln2_beta"]).reshape(B, L, H)
    return out


# ---------------------------------------------------------------------------
# Pure-JAX reference (mirrors the PyTorch forward exactly, eval mode)
# ---------------------------------------------------------------------------
def reference_gru_attention_layer(params, x, *, n_head=8, eps=1e-12):
    B, L, H = x.shape
    dh = H // n_head
    w_ih, w_hh = params["gru_w_ih"], params["gru_w_hh"]
    b_ih, b_hh = params["gru_b_ih"], params["gru_b_hh"]

    def gru_step(h, x_t):
        gx = x_t @ w_ih.T + b_ih
        gh = h @ w_hh.T + b_hh
        r = jax.nn.sigmoid(gx[:, :H] + gh[:, :H])
        z = jax.nn.sigmoid(gx[:, H:2 * H] + gh[:, H:2 * H])
        n = jnp.tanh(gx[:, 2 * H:] + r * gh[:, 2 * H:])
        h_new = (1.0 - z) * n + z * h
        return h_new, h_new

    h0 = jnp.zeros((B, H), jnp.float32)
    _, hs = jax.lax.scan(gru_step, h0, jnp.swapaxes(x, 0, 1))
    gru_out = jnp.swapaxes(hs, 0, 1)

    def layernorm(t, g, b):
        mean = t.mean(-1, keepdims=True)
        var = jnp.square(t - mean).mean(-1, keepdims=True)
        return g * (t - mean) / jnp.sqrt(var + eps) + b

    y1 = layernorm(x + gru_out, params["ln1_gamma"], params["ln1_beta"])

    qkv = y1 @ params["attn_w_qkv"].T + params["attn_b_qkv"]
    q, k, v = jnp.split(qkv, 3, axis=-1)

    def split_heads(t):
        return t.reshape(B, L, n_head, dh).transpose(0, 2, 1, 3)

    qh = split_heads(q) * dh ** (-0.5)
    kh = split_heads(k)
    vh = split_heads(v)
    logits = jnp.einsum("bhqd,bhkd->bhqk", qh, kh)
    w = jax.nn.softmax(logits, axis=-1)
    ctx = jnp.einsum("bhqk,bhkd->bhqd", w, vh)
    ctx = ctx.transpose(0, 2, 1, 3).reshape(B, L, H)
    y2 = ctx @ params["attn_w_o"].T + params["attn_b_o"]

    return layernorm(y1 + y2, params["ln2_gamma"], params["ln2_beta"])


# ---------------------------------------------------------------------------
# Deterministic parameter init (PyTorch-layout weights)
# ---------------------------------------------------------------------------
def init_params(key, hidden):
    keys = jax.random.split(key, 8)
    bound = 1.0 / math.sqrt(hidden)

    def u(kk, shape):
        return jax.random.uniform(kk, shape, jnp.float32, -bound, bound)

    return {
        "gru_w_ih": u(keys[0], (3 * hidden, hidden)),
        "gru_w_hh": u(keys[1], (3 * hidden, hidden)),
        "gru_b_ih": u(keys[2], (3 * hidden,)),
        "gru_b_hh": u(keys[3], (3 * hidden,)),
        "ln1_gamma": jnp.ones((hidden,), jnp.float32),
        "ln1_beta": jnp.zeros((hidden,), jnp.float32),
        "attn_w_qkv": u(keys[4], (3 * hidden, hidden)),
        "attn_b_qkv": u(keys[5], (3 * hidden,)),
        "attn_w_o": u(keys[6], (hidden, hidden)),
        "attn_b_o": u(keys[7], (hidden,)),
        "ln2_gamma": jnp.ones((hidden,), jnp.float32),
        "ln2_beta": jnp.zeros((hidden,), jnp.float32),
    }


if __name__ == "__main__":
    B, L, H, N_HEAD = 2, 8, 32, 8

    root = jax.random.PRNGKey(0)
    kx, kp = jax.random.split(root)
    x = jax.random.normal(kx, (B, L, H), jnp.float32)
    params = init_params(kp, H)

    out = gru_attention_layer(params, x, n_head=N_HEAD)
    out = jax.block_until_ready(out)

    ref = reference_gru_attention_layer(params, x, n_head=N_HEAD)
    assert out.shape == (B, L, H)
    max_err = float(jnp.max(jnp.abs(out - ref)))
    assert jnp.allclose(out, ref, rtol=1e-2, atol=1e-2), (
        f"mismatch vs reference (max abs err {max_err})")

    print("KERNEL_OK")
</pallas_src>

<mosaic_0001>
module attributes {stable_mosaic.version = 11 : i64} {
  func.func @_linear_kernel(%arg0: i32, %arg1: i32, %arg2: i32, %arg3: memref<16x32xf32, #tpu.memory_space<vmem>>, %arg4: memref<96x32xf32, #tpu.memory_space<vmem>>, %arg5: memref<1x96xf32, #tpu.memory_space<vmem>>, %arg6: memref<16x96xf32, #tpu.memory_space<vmem>>, %arg7: memref<16x96xf32, #tpu.memory_space<vmem>>) attributes {dimension_semantics = [#tpu.dimension_semantics<parallel>, #tpu.dimension_semantics<parallel>, #tpu.dimension_semantics<arbitrary>], iteration_bounds = array<i64: 1, 1, 1>, scalar_prefetch = 0 : i64, scratch_operands = 1 : i64, tpu.core_type = #tpu.core_type<tc>, window_params = [{transform_indices = @transform_0, window_bounds = array<i64: 16, 32>}, {transform_indices = @transform_1, window_bounds = array<i64: 96, 32>}, {transform_indices = @transform_2, window_bounds = array<i64: 1, 96>}, {transform_indices = @transform_3, window_bounds = array<i64: 16, 96>}]} {
    %c0_i32 = arith.constant 0 : i32
    %0 = arith.cmpi eq, %arg2, %c0_i32 : i32
    %1 = arith.extui %0 : i1 to i32
    %c0_i32_0 = arith.constant 0 : i32
    %2 = arith.cmpi ne, %1, %c0_i32_0 : i32
    scf.if %2 {
      %cst_10 = arith.constant 0.000000e+00 : f32
      %12 = vector.broadcast %cst_10 : f32 to vector<16x96xf32>
      %c0_11 = arith.constant 0 : index
      %c0_12 = arith.constant 0 : index
      %13 = vector.load %arg7[%c0_11, %c0_12] : memref<16x96xf32, #tpu.memory_space<vmem>>, vector<16x96xf32>
      tpu.vector_store %arg7[%c0_11, %c0_12], %12 {strides = array<i32>} : memref<16x96xf32, #tpu.memory_space<vmem>>, vector<16x96xf32>,
    } else {
    }
    %c0 = arith.constant 0 : index
    %c0_1 = arith.constant 0 : index
    %3 = vector.load %arg7[%c0, %c0_1] : memref<16x96xf32, #tpu.memory_space<vmem>>, vector<16x96xf32>
    %c0_2 = arith.constant 0 : index
    %c0_3 = arith.constant 0 : index
    %4 = vector.load %arg3[%c0_2, %c0_3] : memref<16x32xf32, #tpu.memory_space<vmem>>, vector<16x32xf32>
    %c0_4 = arith.constant 0 : index
    %c0_5 = arith.constant 0 : index
    %5 = vector.load %arg4[%c0_4, %c0_5] : memref<96x32xf32, #tpu.memory_space<vmem>>, vector<96x32xf32>
    %cst = arith.constant dense<0.000000e+00> : vector<16x96xf32>
    %6 = tpu.matmul %4, %5, %cst {dimension_numbers = #tpu.dot_dimension_numbers<[1], [1], [0], [0], [0, 0, 1, 0], [], []>} : vector<16x32xf32>, vector<96x32xf32>, vector<16x96xf32> -> vector<16x96xf32>
    %7 = arith.addf %3, %6 : vector<16x96xf32>
    %c0_6 = arith.constant 0 : index
    %c0_7 = arith.constant 0 : index
    %8 = vector.load %arg7[%c0_6, %c0_7] : memref<16x96xf32, #tpu.memory_space<vmem>>, vector<16x96xf32>
    tpu.vector_store %arg7[%c0_6, %c0_7], %7 {strides = array<i32>} : memref<16x96xf32, #tpu.memory_space<vmem>>, vector<16x96xf32>,
    %c0_i32_8 = arith.constant 0 : i32
    %9 = arith.cmpi eq, %arg2, %c0_i32_8 : i32
    %10 = arith.extui %9 : i1 to i32
    %c0_i32_9 = arith.constant 0 : i32
    %11 = arith.cmpi ne, %10, %c0_i32_9 : i32
    scf.if %11 {
      %c0_10 = arith.constant 0 : index
      %c0_11 = arith.constant 0 : index
      %12 = vector.load %arg7[%c0_10, %c0_11] : memref<16x96xf32, #tpu.memory_space<vmem>>, vector<16x96xf32>
      %c0_12 = arith.constant 0 : index
      %c0_13 = arith.constant 0 : index
      %13 = vector.load %arg5[%c0_12, %c0_13] : memref<1x96xf32, #tpu.memory_space<vmem>>, vector<1x96xf32>
      %14 = vector.broadcast %13 : vector<1x96xf32> to vector<16x96xf32>
      %15 = arith.addf %12, %14 : vector<16x96xf32>
      %c0_14 = arith.constant 0 : index
      %c0_15 = arith.constant 0 : index
      %16 = vector.load %arg6[%c0_14, %c0_15] : memref<16x96xf32, #tpu.memory_space<vmem>>, vector<16x96xf32>
      tpu.vector_store %arg6[%c0_14, %c0_15], %15 {strides = array<i32>} : memref<16x96xf32, #tpu.memory_space<vmem>>, vector<16x96xf32>,
    } else {
    }
    return
  }
  func.func @transform_0(%arg0: i32, %arg1: i32, %arg2: i32) -> (i32, i32) {
    %c0_i32 = arith.constant 0 : i32
    return %arg0, %arg2 : i32, i32
  }
  func.func @transform_1(%arg0: i32, %arg1: i32, %arg2: i32) -> (i32, i32) {
    %c0_i32 = arith.constant 0 : i32
    return %arg1, %arg2 : i32, i32
  }
  func.func @transform_2(%arg0: i32, %arg1: i32, %arg2: i32) -> (i32, i32) {
    %c0_i32 = arith.constant 0 : i32
    %c0_i32_0 = arith.constant 0 : i32
    return %c0_i32, %arg1 : i32, i32
  }
  func.func @transform_3(%arg0: i32, %arg1: i32, %arg2: i32) -> (i32, i32) {
    %c0_i32 = arith.constant 0 : i32
    return %arg0, %arg1 : i32, i32
  }
}

</mosaic_0001>

<bundles_post_ra>
// kernel: tpu_custom_call.1
= control target key start
LH: loop header
LB: loop body
LE: loop exit
PB: predicated region body
PF: predicated region fallthrough
CT: control target
= control target key end

     0   :  { %vm38_vm0 = vcmask 261120   ;;  %vm19_vm1 = vcmask 785408   ;;  %v275_v2 = vmov 0.0   ;;  %s379_s0 = inlined_call_operand.vmem [shape: f32[16,32], index: 0, kind: input, shape index: {}]   ;;  %s380_s1 = inlined_call_operand.vmem [shape: f32[96,32], index: 1, kind: input, shape index: {}]   ;;  %s381_s2 = inlined_call_operand.vmem [shape: f32[1,96], index: 2, kind: input, shape index: {}]   ;;  %s382_s3 = inlined_call_operand.hbm [shape: f32[16,96], index: 3, kind: output, shape index: {}]  }
   0x1   :  { %v37_v0 = vld [vmem:[%s380_s1 + $0x58] sm:$0xff]  ;;  %v36_v1 = vld [vmem:[%s380_s1 + $0x50] sm:$0xff]  ;;  %21 = vst.msk [vmem:[#allocation2 + $0x8] sm:$0xff] %vm19_vm1, %v275_v2  ;;  %20 = vst.msk [vmem:[#allocation2] sm:$0xff] %vm19_vm1, %v275_v2 }
   0x2   :  { %222 = vmatprep.subr.msk.mxu0 %vm38_vm0, %v37_v0  ;;  %v35_v3 = vld [vmem:[%s380_s1 + $0x48] sm:$0xff]  ;;  %v24_v4 = vld [vmem:[%s379_s0] sm:$0xff] }
   0x3   :  { %223 = vmatpush3.xpose.msk.msra.mxu0 %vm38_vm0, %v37_v0 }
   0x4   :  { %224 = vmatprep.subr.msk.mxu0 %vm38_vm0, %v36_v1 }
   0x5   :  { %8 = vsyncpa [#allocation4], 0  ;;  %246 = vmatprep.mubr.msk.f32.mxu0 %vm38_vm0, %v24_v4  ;;  %v34_v5 = vld [vmem:[%s380_s1 + $0x40] sm:$0xff]  ;;  %v33_v6 = vld [vmem:[%s380_s1 + $0x38] sm:$0xff]  ;;  %s276_s14 = smov [#allocation3]  }
   0x6   :  { %v32_v7 = vld [vmem:[%s380_s1 + $0x30] sm:$0xff]  ;;  %v31_v8 = vld [vmem:[%s380_s1 + $0x28] sm:$0xff]  ;;  %v30_v9 = vld [vmem:[%s380_s1 + $0x20] sm:$0xff]  ;;  %s182_s15 = sshll.u32 %s276_s14, 4  ;;  %s183_s15 = int_to_ptr.vmem [resolvable:$true] %s182_s15 }
   0x7   :  { %225 = vmatpush3.xpose.msk.msra.mxu0 %vm38_vm0, %v36_v1  ;;  %v29_v10 = vld [vmem:[%s380_s1 + $0x18] sm:$0xff]  ;;  %v28_v11 = vld [vmem:[%s380_s1 + $0x10] sm:$0xff]  ;;  %v27_v12 = vld [vmem:[%s380_s1 + $0x8] sm:$0xff]  ;;  %p258_p1 = scmp.lt.s32.totalorder %s183_s15, %s183_s15 }
   0x8   :  { %226 = vmatprep.subr.msk.mxu0 %vm38_vm0, %v35_v3  ;;  %v26_v13 = vld [vmem:[%s380_s1] sm:$0xff]  ;;  %v25_v14 = vld [vmem:[%s379_s0 + $0x8] sm:$0xff]  ;;  %s253_s0 = scalar_lea.vmem %s183_s15, 256 }
   0x9   :  { %v23_v15 = vld [vmem:[#allocation2 + $0x8] sm:$0xff]  ;;  %v22_v17 = vld [vmem:[#allocation2] sm:$0xff]  ;;  %p254_p0 = scmp.ne.s32.totalorder %s183_s15, %s253_s0  ;;  %p259_p2 = scmp.lt.s32.totalorder %s253_s0, %s253_s0 }
   0xa   :  { %v207_v21 = vld [vmem:[%s381_s2] ss:$0 sm:$0xff] }
   0xb   :  { %227 = vmatpush3.xpose.msk.msra.mxu0 %vm38_vm0, %v35_v3  ;;  %p260_p3 = por %p259_p2, %p258_p1 }
   0xc   :  { %228 = vmatprep.subr.msk.mxu0 %vm38_vm0, %v34_v5 }
   0xd   :  { %p261_p4 = pnand %p260_p3, %p254_p0 }
   0xf   :  { %229 = vmatpush3.xpose.msk.msra.mxu0 %vm38_vm0, %v34_v5 }
  0x10   :  { %230 = vmatprep.subr.msk.mxu0 %vm38_vm0, %v33_v6 }
  0x13   :  { %231 = vmatpush3.xpose.msk.msra.mxu0 %vm38_vm0, %v33_v6 }
  0x14   :  { %232 = vmatprep.subr.msk.mxu0 %vm38_vm0, %v32_v7 }
  0x17   :  { %233 = vmatpush3.xpose.msk.msra.mxu0 %vm38_vm0, %v32_v7 }
  0x18   :  { %234 = vmatprep.subr.msk.mxu0 %vm38_vm0, %v31_v8 }
  0x1b   :  { %235 = vmatpush3.xpose.msk.msra.mxu0 %vm38_vm0, %v31_v8 }
  0x1c   :  { %236 = vmatprep.subr.msk.mxu0 %vm38_vm0, %v30_v9 }
  0x1f   :  { %237 = vmatpush3.xpose.msk.msra.mxu0 %vm38_vm0, %v30_v9 }
  0x20   :  { %238 = vmatprep.subr.msk.mxu0 %vm38_vm0, %v29_v10 }
  0x23   :  { %239 = vmatpush3.xpose.msk.msra.mxu0 %vm38_vm0, %v29_v10 }
  0x24   :  { %240 = vmatprep.subr.msk.mxu0 %vm38_vm0, %v28_v11 }
  0x27   :  { %241 = vmatpush3.xpose.msk.msra.mxu0 %vm38_vm0, %v28_v11 }
  0x28   :  { %242 = vmatprep.subr.msk.mxu0 %vm38_vm0, %v27_v12 }
  0x2b   :  { %243 = vmatpush3.xpose.msk.msra.mxu0 %vm38_vm0, %v27_v12 }
  0x2c   :  { %244 = vmatprep.subr.msk.mxu0 %vm38_vm0, %v26_v13 }
  0x2f   :  { %245 = vmatpush3.xpose.msk.msra.mxu0 %vm38_vm0, %v26_v13 }
  0x32   :  { %247 = vmatmul.mubr.msk.f32.vlgmr.msra.gmra.mxu0 %vm38_vm0, %v25_v14 }
  0xf2   :  { %v248_v16 = vpop.f32.mrf.mxu0 }
  0xf3   :  { %v157_v18 = vadd.f32 %v248_v16, %v23_v15 }
  0xf4   :  { %v147_v19 = vpop.f32.mrf.mxu0 }
  0xf5   :  { %160 = vst.msk [vmem:[#allocation2 + $0x8] sm:$0xff] %vm19_vm1, %v157_v18  ;;  %v156_v20 = vadd.f32 %v147_v19, %v22_v17 }
  0xf7   :  { %159 = vst.msk [vmem:[#allocation2] sm:$0xff] %vm19_vm1, %v156_v20 }
  0xfc   :  { %v165_v22 = vld [vmem:[#allocation2 + $0x8] sm:$0xff] }
  0xfd   :  { %v174_v23 = vadd.f32 %v207_v21, %v165_v22 }
  0xfe   :  { %v164_v24 = vld [vmem:[#allocation2] sm:$0xff] }
  0xff   :  { %v173_v25 = vadd.f32 %v207_v21, %v164_v24  ;;  %176 = vst.msk [vmem:[#allocation3 + $0x8] sm:$0xff] %vm19_vm1, %v174_v23 }
 0x101   :  { %175 = vst.msk [vmem:[#allocation3] sm:$0xff] %vm19_vm1, %v173_v25 }
 0x102   :  { %264 = shalt.err (!%p261_p4)
}
 0x103   :  { %s277_s16 = smov 128   ;;  %s278_s2 = smov 8  }
 0x104   :  { %188 = dma.vmem_to_hbm [thread:$0]  %s183_s15, 256, %s382_s3, [#allocation4], %s277_s16, %s277_s16, %s278_s2  }
 0x105   :  { %273 = dma.done.wait [#allocation4], 256  }
 0x106   :  { %274 = vsyncadd [#allocation4], 4294967040 }
 0x107   :  { %192 = vsyncpa [#allocation4], 1 }

</bundles_post_ra>
